<compile_context>
chip_gen: v7x
topology: tpu7x:2x2x1
jax: 0.10.0
libtpu: 0.0.40
codegen_flags: <defaults>
</compile_context>

<pallas_src>
import jax
import jax.numpy as jnp
from jax.experimental import pallas as pl
from jax.experimental.pallas import tpu as pltpu


def _round_up(x, m):
    return ((x + m - 1) // m) * m


def _vmem_budget_bytes():
    """Usable VMEM budget for tile planning (conservative, generation-aware)."""
    try:
        cap = getattr(pltpu.get_tpu_info(), "vmem_capacity_bytes", None)
        if cap:
            return int(cap * 0.70)          # ~90 MiB on v5e/v6e, ~45 MiB on v7x
    except Exception:
        pass
    return 48 * 1024 * 1024                 # safe fallback on all generations


def _choose_tm(M, hidden, Vp, tn, x_bytes, w_bytes, out_bytes, budget):
    """Largest row tile (multiple of 8 sublanes, <= 512) whose working set fits."""
    tm = _round_up(min(512, max(8, M)), 8)
    while tm > 8:
        need = (2 * tm * Vp * out_bytes       # resident output block (double-buffered)
                + 2 * tm * hidden * x_bytes   # pipelined x block
                + 2 * hidden * tn * w_bytes   # manual weight-chunk double buffer
                + 2 * Vp * 4                  # bias block
                + (2 << 20))                  # slack for spills / misc
        if need <= budget:
            break
        tm -= 8
    return max(8, tm)


def _make_mlm_kernel(tn, n_chunks, out_dtype):
    def kernel(x_ref, b_ref, w_hbm, o_ref, w_buf, dma_sem):
        # x_ref : [tm, hidden]   VMEM, pipelined over the row-block grid
        # b_ref : [1, Vp]        VMEM, resident (index_map constant in i)
        # w_hbm : [hidden, Vp]   HBM, streamed manually in [hidden, tn] chunks
        # o_ref : [tm, Vp]       VMEM resident output block; written to HBM once
        # w_buf : [2, hidden, tn] VMEM scratch; dma_sem : DMA semaphores (2,)
        def w_copy(j, slot):
            return pltpu.make_async_copy(
                w_hbm.at[:, j * tn:(j + 1) * tn], w_buf.at[slot], dma_sem.at[slot])

        w_copy(0, 0).start()

        tm = o_ref.shape[0]
        m = jnp.full((tm, 1), -jnp.inf, dtype=jnp.float32)    # running max
        l = jnp.zeros((tm, 1), dtype=jnp.float32)             # running sum-exp

        for j in range(n_chunks):            # static unroll -> static column slices
            slot = j % 2
            w_copy(j, slot).wait()
            if j + 1 < n_chunks:             # prefetch next weight chunk
                w_copy(j + 1, 1 - slot).start()

            lo, hi = j * tn, (j + 1) * tn
            # MXU matmul in native input dtype, f32 accumulation.
            logits = jnp.dot(x_ref[...], w_buf[slot],
                             preferred_element_type=jnp.float32)
            logits = logits + b_ref[:, lo:hi].astype(jnp.float32)

            # Online (streaming) log-sum-exp update.
            m_new = jnp.maximum(m, jnp.max(logits, axis=-1, keepdims=True))
            l = l * jnp.exp(m - m_new) + jnp.sum(jnp.exp(logits - m_new),
                                                 axis=-1, keepdims=True)
            m = m_new

            # Stash raw logits in the resident output block (128-aligned cols).
            o_ref[:, lo:hi] = logits.astype(out_dtype)

        # Final normalization: log_softmax = logits - (m + log(l)).
        lse = m + jnp.log(l)
        o_ref[...] = (o_ref[...].astype(jnp.float32) - lse).astype(out_dtype)

    return kernel


def masked_language_model(x, weight, bias, *, tm=None, tn=1024,
                          out_dtype=jnp.float32, vmem_budget_bytes=None):
    """log_softmax(x @ weight + bias, axis=-1).

    x:      [batch, seq, hidden]
    weight: [hidden, vocab]  (transposed nn.Linear weight; may be bf16)
    bias:   [vocab]
    """
    batch, seq, hidden = x.shape
    assert weight.shape[0] == hidden, "weight must be [hidden, vocab]"
    vocab = weight.shape[1]
    M = batch * seq

    budget = vmem_budget_bytes if vmem_budget_bytes is not None else _vmem_budget_bytes()

    # ---- vocab tiling: weight streamed in [hidden, tn] chunks ----
    tn = max(128, _round_up(min(tn, _round_up(vocab, 128)), 128))
    Vp = _round_up(vocab, tn)
    n_chunks = Vp // tn

    x_bytes = jnp.dtype(x.dtype).itemsize
    w_bytes = jnp.dtype(weight.dtype).itemsize
    out_bytes = jnp.dtype(out_dtype).itemsize

    # ---- row tiling ----
    if tm is None:
        tm = _choose_tm(M, hidden, Vp, tn, x_bytes, w_bytes, out_bytes, budget)
    tm = _round_up(min(tm, _round_up(M, 8)), 8)
    Mp = _round_up(M, tm)
    grid_m = Mp // tm

    # ---- pad awkward shapes instead of asserting divisibility ----
    x2d = x.reshape(M, hidden)
    if Mp != M:
        x2d = jnp.pad(x2d, ((0, Mp - M), (0, 0)))
    w2d = weight
    b2d = bias.reshape(1, vocab)
    if Vp != vocab:
        w2d = jnp.pad(w2d, ((0, 0), (0, Vp - vocab)))
        # Padded classes get a huge negative bias so exp(.) underflows to 0.
        b2d = jnp.pad(b2d, ((0, 0), (0, Vp - vocab)), constant_values=-1e30)

    kernel = _make_mlm_kernel(tn=tn, n_chunks=n_chunks, out_dtype=out_dtype)

    cost = pl.CostEstimate(
        flops=2 * Mp * hidden * Vp,
        transcendentals=Mp * Vp,
        bytes_accessed=int(Mp * hidden * x_bytes
                           + grid_m * hidden * Vp * w_bytes
                           + Vp * 4
                           + Mp * Vp * out_bytes),
    )

    out = pl.pallas_call(
        kernel,
        out_shape=jax.ShapeDtypeStruct((Mp, Vp), out_dtype),
        grid_spec=pltpu.PrefetchScalarGridSpec(
            num_scalar_prefetch=0,
            grid=(grid_m,),
            in_specs=[
                pl.BlockSpec((tm, hidden), lambda i: (i, 0)),   # x row block
                pl.BlockSpec((1, Vp), lambda i: (0, 0)),        # bias (resident)
                pl.BlockSpec(memory_space=pl.ANY),              # weight stays in HBM
            ],
            out_specs=pl.BlockSpec((tm, Vp), lambda i: (i, 0)),
            scratch_shapes=[
                pltpu.VMEM((2, hidden, tn), w2d.dtype),         # weight chunk dbl-buf
                pltpu.SemaphoreType.DMA((2,)),
            ],
        ),
        compiler_params=pltpu.CompilerParams(
            dimension_semantics=("parallel",),
            vmem_limit_bytes=int(budget + (8 << 20)),
        ),
        cost_estimate=cost,
    )(x2d, b2d, w2d)

    if Mp != M or Vp != vocab:
        out = out[:M, :vocab]
    return out.reshape(batch, seq, vocab)


if __name__ == "__main__":
    # Small shapes consistent with the module's forward.
    batch, seq, hidden, vocab = 2, 8, 32, 128

    key = jax.random.PRNGKey(0)
    kx, kw, kb = jax.random.split(key, 3)

    # Deterministic init (matches nn.Linear's uniform(-1/sqrt(h), 1/sqrt(h))).
    bound = 1.0 / (hidden ** 0.5)
    weight = jax.random.uniform(kw, (hidden, vocab), jnp.float32, -bound, bound)
    bias = jax.random.uniform(kb, (vocab,), jnp.float32, -bound, bound)
    x = jax.random.normal(kx, (batch, seq, hidden), jnp.float32)

    out = jax.block_until_ready(masked_language_model(x, weight, bias))
    ref = jax.nn.log_softmax(x @ weight + bias, axis=-1)
    assert out.shape == (batch, seq, vocab)
    assert jnp.allclose(out, ref, atol=2e-5, rtol=1e-5), \
        float(jnp.max(jnp.abs(out - ref)))

    # Also exercise the multi-chunk + padding path (vocab not a multiple of tn,
    # batch*seq not a multiple of the row tile).
    b2, s2, h2, v2 = 2, 5, 32, 200
    k2x, k2w, k2b = jax.random.split(jax.random.PRNGKey(1), 3)
    w2 = jax.random.uniform(k2w, (h2, v2), jnp.float32, -bound, bound)
    bb2 = jax.random.uniform(k2b, (v2,), jnp.float32, -bound, bound)
    x2 = jax.random.normal(k2x, (b2, s2, h2), jnp.float32)
    out2 = jax.block_until_ready(masked_language_model(x2, w2, bb2, tn=128))
    ref2 = jax.nn.log_softmax(x2 @ w2 + bb2, axis=-1)
    assert out2.shape == (b2, s2, v2)
    assert jnp.allclose(out2, ref2, atol=2e-5, rtol=1e-5), \
        float(jnp.max(jnp.abs(out2 - ref2)))

    print("KERNEL_OK")
</pallas_src>

<mosaic_0001>
module attributes {stable_mosaic.version = 11 : i64} {
  func.func @kernel(%arg0: i32, %arg1: memref<16x32xf32, #tpu.memory_space<vmem>>, %arg2: memref<1x128xf32, #tpu.memory_space<vmem>>, %arg3: memref<32x128xf32, #tpu.memory_space<any>>, %arg4: memref<16x128xf32, #tpu.memory_space<vmem>>, %arg5: memref<2x32x128xf32, #tpu.memory_space<vmem>>, %arg6: memref<2x!tpu.dma_semaphore, #tpu.memory_space<semaphore_mem>>) attributes {dimension_semantics = [#tpu.dimension_semantics<parallel>], iteration_bounds = array<i64: 1>, scalar_prefetch = 0 : i64, scratch_operands = 2 : i64, tpu.core_type = #tpu.core_type<tc>, window_params = [{transform_indices = @transform_0, window_bounds = array<i64: 16, 32>}, {pipeline_mode = #tpu.pipeline_mode<synchronous>, transform_indices = @transform_1, window_bounds = array<i64: 1, 128>}, {}, {transform_indices = @transform_3, window_bounds = array<i64: 16, 128>}]} {
    %c0_i32 = arith.constant 0 : i32
    %c0_i32_0 = arith.constant 0 : i32
    %c0_i32_1 = arith.constant 0 : i32
    %c0_i32_2 = arith.constant 0 : i32
    %0 = tpu.memref_slice %arg3[%c0_i32_1, %c0_i32_2] : memref<32x128xf32, #tpu.memory_space<any>> -> memref<32x128xf32, #tpu.memory_space<any>>
    %c0_i32_3 = arith.constant 0 : i32
    %c0_i32_4 = arith.constant 0 : i32
    %1 = tpu.memref_slice %arg5[%c0_i32, %c0_i32_3, %c0_i32_4] : memref<2x32x128xf32, #tpu.memory_space<vmem>> -> memref<1x32x128xf32, #tpu.memory_space<vmem>>
    %2 = tpu.memref_squeeze %1 : memref<1x32x128xf32, #tpu.memory_space<vmem>> -> memref<32x128xf32, #tpu.memory_space<vmem>>
    %3 = tpu.memref_slice %arg6[%c0_i32_0] : memref<2x!tpu.dma_semaphore, #tpu.memory_space<semaphore_mem>> -> memref<1x!tpu.dma_semaphore, #tpu.memory_space<semaphore_mem>>
    %4 = tpu.memref_squeeze %3 : memref<1x!tpu.dma_semaphore, #tpu.memory_space<semaphore_mem>> -> memref<!tpu.dma_semaphore, #tpu.memory_space<semaphore_mem>>
    tpu.enqueue_dma source(%0 : memref<32x128xf32, #tpu.memory_space<any>>) target(%2 : memref<32x128xf32, #tpu.memory_space<vmem>>) target_semaphore(%4 : memref<!tpu.dma_semaphore, #tpu.memory_space<semaphore_mem>>)
    %cst = arith.constant 0xFF800000 : f32
    %5 = vector.broadcast %cst : f32 to vector<16x1xf32>
    %cst_5 = arith.constant 0.000000e+00 : f32
    %6 = vector.broadcast %cst_5 : f32 to vector<16x1xf32>
    %c0_i32_6 = arith.constant 0 : i32
    %c0_i32_7 = arith.constant 0 : i32
    %c0_i32_8 = arith.constant 0 : i32
    %c0_i32_9 = arith.constant 0 : i32
    %7 = tpu.memref_slice %arg3[%c0_i32_8, %c0_i32_9] : memref<32x128xf32, #tpu.memory_space<any>> -> memref<32x128xf32, #tpu.memory_space<any>>
    %c0_i32_10 = arith.constant 0 : i32
    %c0_i32_11 = arith.constant 0 : i32
    %8 = tpu.memref_slice %arg5[%c0_i32_6, %c0_i32_10, %c0_i32_11] : memref<2x32x128xf32, #tpu.memory_space<vmem>> -> memref<1x32x128xf32, #tpu.memory_space<vmem>>
    %9 = tpu.memref_squeeze %8 : memref<1x32x128xf32, #tpu.memory_space<vmem>> -> memref<32x128xf32, #tpu.memory_space<vmem>>
    %10 = tpu.memref_slice %arg6[%c0_i32_7] : memref<2x!tpu.dma_semaphore, #tpu.memory_space<semaphore_mem>> -> memref<1x!tpu.dma_semaphore, #tpu.memory_space<semaphore_mem>>
    %11 = tpu.memref_squeeze %10 : memref<1x!tpu.dma_semaphore, #tpu.memory_space<semaphore_mem>> -> memref<!tpu.dma_semaphore, #tpu.memory_space<semaphore_mem>>
    tpu.wait_dma2 semaphore(%11 : memref<!tpu.dma_semaphore, #tpu.memory_space<semaphore_mem>>) src(%7 : memref<32x128xf32, #tpu.memory_space<any>>) dst(%9 : memref<32x128xf32, #tpu.memory_space<vmem>>)
    %c0 = arith.constant 0 : index
    %c0_12 = arith.constant 0 : index
    %12 = vector.load %arg1[%c0, %c0_12] : memref<16x32xf32, #tpu.memory_space<vmem>>, vector<16x32xf32>
    %c0_13 = arith.constant 0 : index
    %c0_14 = arith.constant 0 : index
    %c0_15 = arith.constant 0 : index
    %13 = vector.load %arg5[%c0_13, %c0_14, %c0_15] : memref<2x32x128xf32, #tpu.memory_space<vmem>>, vector<1x32x128xf32>
    %14 = vector.shape_cast %13 : vector<1x32x128xf32> to vector<32x128xf32>
    %cst_16 = arith.constant dense<0.000000e+00> : vector<16x128xf32>
    %15 = tpu.matmul %12, %14, %cst_16 {dimension_numbers = #tpu.dot_dimension_numbers<[1], [0], [0], [1], [0, 0, 1, 1], [], []>} : vector<16x32xf32>, vector<32x128xf32>, vector<16x128xf32> -> vector<16x128xf32>
    %c0_17 = arith.constant 0 : index
    %c0_18 = arith.constant 0 : index
    %16 = vector.load %arg2[%c0_17, %c0_18] : memref<1x128xf32, #tpu.memory_space<vmem>>, vector<1x128xf32>
    %17 = vector.broadcast %16 : vector<1x128xf32> to vector<16x128xf32>
    %18 = arith.addf %15, %17 : vector<16x128xf32>
    %cst_19 = arith.constant dense<0xFF800000> : vector<16xf32>
    %19 = vector.multi_reduction <maximumf>, %18, %cst_19 [1] : vector<16x128xf32> to vector<16xf32>
    %20 = vector.shape_cast %19 : vector<16xf32> to vector<16x1xf32>
    %21 = arith.maximumf %5, %20 : vector<16x1xf32>
    %22 = arith.subf %5, %21 : vector<16x1xf32>
    %23 = math.exp %22 : vector<16x1xf32>
    %24 = arith.mulf %6, %23 : vector<16x1xf32>
    %25 = vector.broadcast %21 : vector<16x1xf32> to vector<16x128xf32>
    %26 = arith.subf %18, %25 : vector<16x128xf32>
    %27 = math.exp %26 : vector<16x128xf32>
    %cst_20 = arith.constant dense<0.000000e+00> : vector<16xf32>
    %28 = vector.multi_reduction <add>, %27, %cst_20 [1] : vector<16x128xf32> to vector<16xf32>
    %29 = vector.shape_cast %28 : vector<16xf32> to vector<16x1xf32>
    %30 = arith.addf %24, %29 : vector<16x1xf32>
    %c0_21 = arith.constant 0 : index
    %c0_22 = arith.constant 0 : index
    %31 = vector.load %arg4[%c0_21, %c0_22] : memref<16x128xf32, #tpu.memory_space<vmem>>, vector<16x128xf32>
    tpu.vector_store %arg4[%c0_21, %c0_22], %18 {strides = array<i32>} : memref<16x128xf32, #tpu.memory_space<vmem>>, vector<16x128xf32>,
    %32 = math.log %30 : vector<16x1xf32>
    %33 = arith.addf %21, %32 : vector<16x1xf32>
    %c0_23 = arith.constant 0 : index
    %c0_24 = arith.constant 0 : index
    %34 = vector.load %arg4[%c0_23, %c0_24] : memref<16x128xf32, #tpu.memory_space<vmem>>, vector<16x128xf32>
    %35 = vector.broadcast %33 : vector<16x1xf32> to vector<16x128xf32>
    %36 = arith.subf %34, %35 : vector<16x128xf32>
    %c0_25 = arith.constant 0 : index
    %c0_26 = arith.constant 0 : index
    %37 = vector.load %arg4[%c0_25, %c0_26] : memref<16x128xf32, #tpu.memory_space<vmem>>, vector<16x128xf32>
    tpu.vector_store %arg4[%c0_25, %c0_26], %36 {strides = array<i32>} : memref<16x128xf32, #tpu.memory_space<vmem>>, vector<16x128xf32>,
    return
  }
  func.func @transform_0(%arg0: i32) -> (i32, i32) {
    %c0_i32 = arith.constant 0 : i32
    %c0_i32_0 = arith.constant 0 : i32
    return %arg0, %c0_i32 : i32, i32
  }
  func.func @transform_1(%arg0: i32) -> (i32, i32) {
    %c0_i32 = arith.constant 0 : i32
    %c0_i32_0 = arith.constant 0 : i32
    %c0_i32_1 = arith.constant 0 : i32
    return %c0_i32, %c0_i32_0 : i32, i32
  }
  func.func @transform_3(%arg0: i32) -> (i32, i32) {
    %c0_i32 = arith.constant 0 : i32
    %c0_i32_0 = arith.constant 0 : i32
    return %arg0, %c0_i32 : i32, i32
  }
}

</mosaic_0001>

<bundles_post_ra>
// kernel: tpu_custom_call.1
= control target key start
LH: loop header
LB: loop body
LE: loop exit
PB: predicated region body
PF: predicated region fallthrough
CT: control target
= control target key end

     0   :  { %8 = vsyncpa [#allocation5], 0  ;;  %s393_s0 = inlined_call_operand.hbm [shape: f32[16,32], index: 0, kind: input, shape index: {}]   ;;  %s394_s1 = inlined_call_operand.vmem [shape: f32[1,128], index: 1, kind: input, shape index: {}]   ;;  %s395_s2 = inlined_call_operand.hbm [shape: f32[32,128], index: 2, kind: input, shape index: {}]   ;;  %s396_s3 = inlined_call_operand.hbm [shape: f32[16,128], index: 3, kind: output, shape index: {}]  }
   0x1   :  { %9 = vsyncpa [#allocation6], 0  ;;  %s323_s12 = smov [#allocation4]   ;;  %s251_s16 = scalar_lea.hbm %s393_s0, 256 }
   0x2   :  { %s15_s13 = sshll.u32 %s323_s12, 4  ;;  %p252_p0 = scmp.ne.s32.totalorder %s393_s0, %s251_s16  ;;  %s16_s13 = int_to_ptr.vmem [resolvable:$true] %s15_s13 }
   0x3   :  { %p255_p1 = scmp.lt.u32.totalorder %s251_s16, %s393_s0 }
   0x5   :  { %p257_p2 = pnand %p255_p1, %p252_p0 }
   0x7   :  { %260 = shalt.err (!%p257_p2)
}
   0x8   :  { %s261_s21 = scalar_lea.vmem %s16_s13, 256  ;;  %p266_p4 = scmp.lt.s32.totalorder %s16_s13, %s16_s13 }
   0x9   :  { %p262_p3 = scmp.ne.s32.totalorder %s16_s13, %s261_s21  ;;  %p267_p5 = scmp.lt.s32.totalorder %s261_s21, %s261_s21 }
   0xb   :  { %p268_p6 = por %p267_p5, %p266_p4 }
   0xd   :  { %p269_p7 = pnand %p268_p6, %p262_p3 }
   0xf   :  { %272 = shalt.err (!%p269_p7)
}
  0x10   :  { %s324_s22 = smov 128   ;;  %s325_s23 = smov 8  }
  0x11   :  { %21 = dma.hbm_to_vmem [thread:$0]  %s393_s0, 256, %s16_s13, [#allocation5], %s324_s22, %s324_s22, %s325_s23  }
  0x12   :  { %317 = dma.done.wait [#allocation5], 256  }
  0x13   :  { %318 = vsyncadd [#allocation5], 4294967040  ;;  %s326_s26 = smov [#allocation2]   ;;  %s273_s30 = scalar_lea.hbm %s395_s2, 512 }
  0x14   :  { %s34_s27 = sshll.u32 %s326_s26, 4  ;;  %p274_p8 = scmp.ne.s32.totalorder %s395_s2, %s273_s30  ;;  %s35_s27 = int_to_ptr.vmem [resolvable:$true] %s34_s27 }
  0x15   :  { %p277_p9 = scmp.lt.u32.totalorder %s273_s30, %s395_s2 }
  0x17   :  { %p279_p10 = pnand %p277_p9, %p274_p8 }
  0x19   :  { %282 = shalt.err (!%p279_p10)  }
  0x1a   :  { %s283_s0 = scalar_lea.vmem %s35_s27, 512  ;;  %s287_s8 = scalar_lea.vmem %s35_s27, 1024 }
  0x1b   :  { %p284_p11 = scmp.ne.s32.totalorder %s35_s27, %s283_s0  ;;  %p288_p12 = scmp.lt.s32.totalorder %s35_s27, %s35_s27 }
  0x1c   :  { %p289_p13 = scmp.lt.s32.totalorder %s287_s8, %s283_s0 }
  0x1e   :  { %p290_p0 = por %p289_p13, %p288_p12 }
  0x20   :  { %p291_p1 = pnand %p290_p0, %p284_p11 }
  0x22   :  { %294 = shalt.err (!%p291_p1)  }
  0x23   :  { %37 = dma.hbm_to_vmem [thread:$0]  %s395_s2, 512, %s35_s27, [#allocation3] }
  0x24   :  { %319 = dma.done.wait [#allocation3], 512 }
  0x25   :  { %320 = vsyncadd [#allocation3], 4294966784  ;;  %vm54_vm0 = vcmask 261120   ;;  %v43_v0 = vld [vmem:[#allocation2] sm:$0xff]  ;;  %v44_v1 = vld [vmem:[#allocation2 + $0x8] sm:$0xff] }
  0x26   :  { %v45_v2 = vld [vmem:[#allocation2 + $0x10] sm:$0xff]  ;;  %v226_v3 = vpack.c.bf16 %v44_v1, %v43_v0  ;;  %v46_v4 = vld [vmem:[#allocation2 + $0x18] sm:$0xff]  ;;  %v41_v5 = vld [vmem:[#allocation4] sm:$0xff] }
  0x27   :  { %v230_v6 = vpack.c.bf16 %v46_v4, %v45_v2  ;;  %223 = vmatprep.mubr.msk.f32.mxu0 %vm54_vm0, %v41_v5  ;;  %v42_v7 = vld [vmem:[#allocation4 + $0x8] sm:$0xff]  ;;  %v204_v8 = vld [vmem:[%s394_s1] ss:$0 sm:$0xff]  ;;  %s327_s1 = smov [#allocation7]  }
  0x28   :  { %227 = vmatprep.subr.bf16.mxu0 %v226_v3  ;;  %s179_s2 = sshll.u32 %s327_s1, 4  ;;  %s180_s2 = int_to_ptr.vmem [resolvable:$true] %s179_s2 }
  0x29   :  { %229 = vmatpush3.bf16.msra.mxu0 %v226_v3  ;;  %s295_s13 = scalar_lea.vmem %s180_s2, 256  ;;  %p300_p3 = scmp.lt.s32.totalorder %s180_s2, %s180_s2 }
  0x2a   :  { %231 = vmatprep.subr.bf16.mxu0 %v230_v6  ;;  %p296_p2 = scmp.ne.s32.totalorder %s180_s2, %s295_s13  ;;  %p301_p4 = scmp.lt.s32.totalorder %s295_s13, %s295_s13 }
  0x2c   :  { %p302_p5 = por %p301_p4, %p300_p3 }
  0x2d   :  { %233 = vmatpush3.bf16.msra.mxu0 %v230_v6 }
  0x2e   :  { %p303_p6 = pnand %p302_p5, %p296_p2 }
  0x30   :  { %224 = vmatmul.mubr.msk.f32.vlgmr.msra.gmra.mrb[0].mxu0 %vm54_vm0, %v42_v7 }
 0x103   :  { %v225_v9 = vpop.f32.mrb[0].mxu0 }
 0x104   :  { %v127_v10 = vpop.f32.mrb[1].mxu0  ;;  %v133_v12 = vadd.f32 %v225_v9, %v204_v8 }
 0x105   :  { %v128_v11 = vadd.f32 %v204_v8, %v127_v10 }
 0x107   :  { %136 = vmax.xlane.f32.xlu0 %v128_v11 }
 0x10b   :  { %138 = vmax.xlane.f32.xlu0 %v133_v12 }
 0x194   :  { %v137_v13 = vpop.xlane.xlu0 %136 }
 0x195   :  { %v148_v14 = vsub.f32 %v128_v11, %v137_v13  ;;  %v140_v21 = vsub.f32 -inf, %v137_v13 }
 0x197   :  { %v150_v15 = vmul.f32 1.442695, %v148_v14  ;;  %v142_v22 = vmul.f32 1.442695, %v140_v21 }
 0x198   :  { %v139_v16 = vpop.xlane.xlu0 %138 }
 0x199   :  { %v149_v17 = vsub.f32 %v133_v12, %v139_v16  ;;  %239 = vpow2.f32 %v150_v15  ;;  %v141_v23 = vsub.f32 -inf, %v139_v16 }
 0x19b   :  { %v152_v18 = vmul.f32 1.442695, %v149_v17  ;;  %v144_v24 = vmul.f32 1.442695, %v141_v23 }
 0x19d   :  { %241 = vpow2.f32 %v152_v18 }
 0x19e   :  { %243 = vpow2.f32 %v142_v22 }
 0x19f   :  { %245 = vpow2.f32 %v144_v24 }
 0x1a3   :  { %v240_v19 = vpop.eup %239 }
 0x1a4   :  { %154 = vadd.xlane.f32.xlu1 %v240_v19 }
 0x1a7   :  { %v242_v20 = vpop.eup %241 }
 0x1a8   :  { %156 = vadd.xlane.f32.xlu1 %v242_v20  ;;  %v244_v25 = vpop.eup %243 }
 0x1a9   :  { %v146_v26 = vmul.f32 0.0, %v244_v25  ;;  %v246_v27 = vpop.eup %245 }
 0x1aa   :  { %v147_v30 = vmul.f32 0.0, %v246_v27 }
 0x231   :  { %v155_v28 = vpop.xlane.xlu1 %154 }
 0x232   :  { %v158_v29 = vadd.f32 %v155_v28, %v146_v26 }
 0x234   :  { %247 = vlog2.f32 %v158_v29 }
 0x235   :  { %v157_v31 = vpop.xlane.xlu1 %156 }
 0x236   :  { %v159_v32 = vadd.f32 %v157_v31, %v147_v30 }
 0x238   :  { %249 = vlog2.f32 %v159_v32 }
 0x23e   :  { %v248_v33 = vpop.eup %247 }
 0x23f   :  { %v163_v34 = vmul.f32 0.6931472, %v248_v33 }
 0x241   :  { %v166_v35 = vadd.f32 %v163_v34, %v137_v13 }
 0x242   :  { %v250_v36 = vpop.eup %249 }
 0x243   :  { %v165_v37 = vmul.f32 0.6931472, %v250_v36  ;;  %v170_v38 = vsub.f32 %v128_v11, %v166_v35 }
 0x245   :  { %v167_v39 = vadd.f32 %v165_v37, %v139_v16  ;;  %172 = vst [vmem:[#allocation7] sm:$0xff] %v170_v38 }
 0x247   :  { %v171_v40 = vsub.f32 %v133_v12, %v167_v39 }
 0x249   :  { %173 = vst [vmem:[#allocation7 + $0x8] sm:$0xff] %v171_v40 }
 0x24a   :  { %306 = shalt.err (!%p303_p6)
}
 0x24b   :  { %s307_s16 = scalar_lea.hbm %s396_s3, 256 }
 0x24c   :  { %p308_p7 = scmp.ne.s32.totalorder %s396_s3, %s307_s16  ;;  %p311_p8 = scmp.lt.u32.totalorder %s307_s16, %s396_s3 }
 0x24e   :  { %p313_p9 = pnand %p311_p8, %p308_p7 }
 0x250   :  { %316 = shalt.err (!%p313_p9)
}
 0x251   :  { %185 = dma.vmem_to_hbm [thread:$0]  %s180_s2, 256, %s396_s3, [#allocation6], %s324_s22, %s324_s22, %s325_s23  }
 0x252   :  { %321 = dma.done.wait [#allocation6], 256  }
 0x253   :  { %322 = vsyncadd [#allocation6], 4294967040 }
 0x254   :  { %189 = vsyncpa [#allocation5], 1 }
 0x255   :  { %190 = vsyncpa [#allocation6], 1 }
 0x256   :  { %191 = vsyncmov [#allocation3] }
 0x259   :  { %s192_s25 = vpop.sfrf %191 }
 0x25a   :  { %p207_p10 = scmp.ne.s32.totalorder %s192_s25, 0 }
 0x25c   :  { %196 = shalt.err (%p207_p10)  }
 0x25d   :  { %198 = vsyncmov [#allocation3 + $0x1] }
 0x260   :  { %s199_s26 = vpop.sfrf %198 }
 0x261   :  { %p208_p11 = scmp.ne.s32.totalorder %s199_s26, 0 }
 0x263   :  { %203 = shalt.err (%p208_p11)  }

</bundles_post_ra>
